<compile_context>
chip_gen: v7x
topology: tpu7x:2x2x1
jax: 0.10.0
libtpu: 0.0.40
codegen_flags: <defaults>
</compile_context>

<pallas_src>
import math
import functools

import jax
import jax.numpy as jnp
from jax.experimental import pallas as pl
from jax.experimental.pallas import tpu as pltpu


# ---------------------------------------------------------------------------
# Kernels
# ---------------------------------------------------------------------------

def _ge_kernel_cols(xT_ref, b_ref, a_ref, o_ref, *, apply_avals):
    """Transposed layout (points on the lane axis) - used when emb < 128.

    xT_ref: (dims, TN)   input points, transposed
    b_ref : (half, dims) bvals with 2*pi already folded in
    a_ref : (half, 1)    avals column
    o_ref : (emb, TN)    rows [0:half] = sin half, rows [half:emb] = cos half
    """
    dims = xT_ref.shape[0]
    half = b_ref.shape[0]

    # proj[h, n] = sum_d (2*pi*b[h, d]) * x[n, d]  -- static VPU unroll,
    # dims is tiny (1..3) so no MXU matmul is needed.
    proj = b_ref[:, 0:1] * xT_ref[0:1, :]
    for d in range(1, dims):
        proj = proj + b_ref[:, d:d + 1] * xT_ref[d:d + 1, :]

    s = jnp.sin(proj)
    c = jnp.cos(proj)
    # TODO(synk): share one range reduction between sin/cos for the VALU-bound
    # regime (v7x, or bf16-output v6e); hidden under HBM writeback elsewhere.
    if apply_avals:
        a = a_ref[...]                      # (half, 1) broadcasts over lanes
        s = a * s
        c = a * c
    # Two direct, lane-dense slice stores (no concatenate temp).
    o_ref[0:half, :] = s.astype(o_ref.dtype)
    o_ref[half:, :] = c.astype(o_ref.dtype)


def _ge_kernel_rows(x_ref, b_ref, a_ref, o_ref, *, apply_avals):
    """Natural layout - used when emb is a multiple of 128 (already lane-dense).

    x_ref: (TN, dims); b_ref: (dims, half) with 2*pi folded; a_ref: (1, half);
    o_ref: (TN, emb) with [:, 0:half] = sin half, [:, half:] = cos half.
    """
    dims = x_ref.shape[1]
    half = b_ref.shape[1]

    proj = x_ref[:, 0:1] * b_ref[0:1, :]
    for d in range(1, dims):
        proj = proj + x_ref[:, d:d + 1] * b_ref[d:d + 1, :]

    s = jnp.sin(proj)
    c = jnp.cos(proj)
    if apply_avals:
        a = a_ref[...]                      # (1, half) broadcasts over sublanes
        s = a * s
        c = a * c
    o_ref[:, 0:half] = s.astype(o_ref.dtype)
    o_ref[:, half:] = c.astype(o_ref.dtype)


# ---------------------------------------------------------------------------
# Tiling heuristic
# ---------------------------------------------------------------------------

def _pick_tile_n(n, emb, out_itemsize):
    """Point-axis tile: large (amortize ~0.35us/grid-step), bounded by a VMEM
    budget for the double-buffered output tiles, and chosen so the grid keeps
    >= 2 steps when possible (v7x megacore) with minimal padding waste."""
    n_ceil = pl.cdiv(n, 128) * 128
    budget_bytes = 8 * 1024 * 1024                      # 2 x output tile budget
    t_max = budget_bytes // max(1, 2 * emb * out_itemsize)
    t_max = max(128, min(32768, (t_max // 128) * 128))
    steps = max(2, pl.cdiv(n_ceil, t_max))              # prefer >= 2 grid steps
    t = pl.cdiv(n_ceil, steps * 128) * 128
    return int(max(128, min(t, t_max)))


# ---------------------------------------------------------------------------
# Wrapper
# ---------------------------------------------------------------------------

@functools.partial(jax.jit, static_argnames=("tile_n", "out_dtype"))
def gaussian_encoding(x, bvals, avals=None, *, tile_n=None, out_dtype=jnp.float32):
    """x: (..., dims); bvals: (half, dims); avals: (half,) or None -> (..., 2*half)."""
    orig_shape = x.shape
    dims = orig_shape[-1]
    half = bvals.shape[0]
    emb = 2 * half
    out_dtype = jnp.dtype(out_dtype)

    x2 = x.reshape(-1, dims).astype(jnp.float32)
    n = x2.shape[0]

    if tile_n is None:
        tile_n = _pick_tile_n(n, emb, out_dtype.itemsize)

    n_pad = pl.cdiv(n, tile_n) * tile_n
    grid = (n_pad // tile_n,)

    b2pi = (2.0 * math.pi) * bvals.astype(jnp.float32)      # fold 2*pi into B
    apply_avals = avals is not None
    a_vec = (avals.astype(jnp.float32) if apply_avals
             else jnp.ones((half,), jnp.float32))

    cost = pl.CostEstimate(
        flops=2 * dims * half * n_pad,
        transcendentals=emb * n_pad,
        bytes_accessed=n_pad * (dims * 4 + emb * out_dtype.itemsize),
    )
    cparams = pltpu.CompilerParams(
        dimension_semantics=("parallel",),
        vmem_limit_bytes=32 * 1024 * 1024,
    )

    if emb % 128 == 0:
        # Natural (N, emb) layout: lane-dense output blocks, no transposes at all.
        if n_pad != n:
            x2 = jnp.pad(x2, ((0, n_pad - n), (0, 0)))
        out = pl.pallas_call(
            functools.partial(_ge_kernel_rows, apply_avals=apply_avals),
            out_shape=jax.ShapeDtypeStruct((n_pad, emb), out_dtype),
            grid_spec=pltpu.PrefetchScalarGridSpec(
                num_scalar_prefetch=0,
                grid=grid,
                in_specs=[
                    pl.BlockSpec((tile_n, dims), lambda i: (i, 0)),
                    pl.BlockSpec((dims, half), lambda i: (0, 0)),
                    pl.BlockSpec((1, half), lambda i: (0, 0)),
                ],
                out_specs=pl.BlockSpec((tile_n, emb), lambda i: (i, 0)),
            ),
            compiler_params=cparams,
            cost_estimate=cost,
        )(x2, b2pi.T, a_vec[None, :])
        if n_pad != n:
            out = out[:n]
        return out.reshape(*orig_shape[:-1], emb)

    # emb < 128 (or not lane-aligned): transposed layout so every kernel store
    # stays lane-dense; relayout back to (..., emb) at the end (halved by bf16).
    xT = x2.T                                     # (dims, n) -- only `dims` rows
    if n_pad != n:
        # Pad after the transpose: single extra pass over the (tiny) input.
        xT = jnp.pad(xT, ((0, 0), (0, n_pad - n)))
    out = pl.pallas_call(
        functools.partial(_ge_kernel_cols, apply_avals=apply_avals),
        out_shape=jax.ShapeDtypeStruct((emb, n_pad), out_dtype),
        grid_spec=pltpu.PrefetchScalarGridSpec(
            num_scalar_prefetch=0,
            grid=grid,
            in_specs=[
                pl.BlockSpec((dims, tile_n), lambda i: (0, i)),
                pl.BlockSpec((half, dims), lambda i: (0, 0)),
                pl.BlockSpec((half, 1), lambda i: (0, 0)),
            ],
            out_specs=pl.BlockSpec((emb, tile_n), lambda i: (0, i)),
        ),
        compiler_params=cparams,
        cost_estimate=cost,
    )(xT, b2pi, a_vec[:, None])
    if n_pad != n:
        out = out[:, :n]
    return out.T.reshape(*orig_shape[:-1], emb)


# ---------------------------------------------------------------------------
# Parameter construction (mirrors the PyTorch module) and pure-JAX reference
# ---------------------------------------------------------------------------

def make_params(key, embedding_size, scale, dims=2, gaussian=True):
    half = embedding_size // 2
    if gaussian:
        bvals = jax.random.normal(key, (half, dims), dtype=jnp.float32) * scale
    else:
        b = 2.0 ** jnp.linspace(0.0, scale, half) - 1.0
        if dims == 1:
            bvals = b[:, None]
        elif dims == 2:
            bb = jnp.stack([b, jnp.zeros_like(b)], axis=-1)
            bvals = jnp.concatenate([bb, jnp.roll(bb, 1, axis=-1)], axis=0)
        else:
            bb = jnp.stack([b] + [jnp.zeros_like(b)] * (dims - 1), axis=-1)
            bvals = jnp.concatenate(
                [bb] + [jnp.roll(bb, i, axis=-1) for i in range(1, dims)], axis=0
            )
    avals = jnp.ones((bvals.shape[0],), dtype=jnp.float32)
    return bvals, avals


def reference(x, bvals, avals):
    proj = 2.0 * math.pi * jnp.matmul(
        x, bvals.T, precision=jax.lax.Precision.HIGHEST
    )
    return jnp.concatenate([avals * jnp.sin(proj), avals * jnp.cos(proj)], axis=-1)


if __name__ == "__main__":
    key = jax.random.PRNGKey(0)
    k_b, k_x, k_b2, k_x2 = jax.random.split(key, 4)

    # ---- Test 1: emb < 128 (transposed lane-dense path), f32 output --------
    embedding_size, scale, dims = 32, 10.0, 2
    batch, seq = 2, 64                                  # N = 128 points
    bvals, avals = make_params(k_b, embedding_size, scale, dims=dims)
    x = jax.random.uniform(k_x, (batch, seq, dims), dtype=jnp.float32)

    out = jax.block_until_ready(gaussian_encoding(x, bvals, avals))
    ref = reference(x, bvals, avals)
    assert out.shape == (batch, seq, embedding_size), out.shape
    assert jnp.allclose(out, ref, atol=1e-3, rtol=1e-3), "f32 mismatch vs reference"

    # ---- Test 2: bf16 output (halved HBM writeback), avals==ones fast path --
    out_bf16 = jax.block_until_ready(
        gaussian_encoding(x, bvals, None, out_dtype=jnp.bfloat16))
    assert out_bf16.dtype == jnp.bfloat16
    assert jnp.allclose(out_bf16.astype(jnp.float32), ref, atol=1e-2, rtol=1e-2), \
        "bf16 mismatch vs reference"

    # ---- Test 3: emb >= 128 -> natural (N, emb) path, no transposes ---------
    embedding_size2, dims2 = 256, 3
    batch2, seq2 = 2, 256                               # N = 512 points
    bvals2, avals2 = make_params(k_b2, embedding_size2, 1.0, dims=dims2)
    x2 = jax.random.uniform(k_x2, (batch2, seq2, dims2), dtype=jnp.float32)

    out2 = jax.block_until_ready(gaussian_encoding(x2, bvals2, avals2))
    ref2 = reference(x2, bvals2, avals2)
    assert out2.shape == (batch2, seq2, embedding_size2), out2.shape
    assert jnp.allclose(out2, ref2, atol=1e-3, rtol=1e-3), "natural-path mismatch"

    print("KERNEL_OK")
</pallas_src>

<mosaic_0001>
module attributes {stable_mosaic.version = 11 : i64} {
  func.func @_ge_kernel_cols(%arg0: i32, %arg1: memref<2x128xf32, #tpu.memory_space<vmem>>, %arg2: memref<16x2xf32, #tpu.memory_space<vmem>>, %arg3: memref<16x1xf32, #tpu.memory_space<vmem>>, %arg4: memref<32x128xf32, #tpu.memory_space<vmem>>) attributes {dimension_semantics = [#tpu.dimension_semantics<parallel>], iteration_bounds = array<i64: 1>, scalar_prefetch = 0 : i64, scratch_operands = 0 : i64, tpu.core_type = #tpu.core_type<tc>, window_params = [{transform_indices = @transform_0, window_bounds = array<i64: 2, 128>}, {pipeline_mode = #tpu.pipeline_mode<synchronous>, transform_indices = @transform_1, window_bounds = array<i64: 16, 2>}, {pipeline_mode = #tpu.pipeline_mode<synchronous>, transform_indices = @transform_2, window_bounds = array<i64: 16, 1>}, {transform_indices = @transform_3, window_bounds = array<i64: 32, 128>}]} {
    %c0 = arith.constant 0 : index
    %c0_0 = arith.constant 0 : index
    %0 = vector.load %arg2[%c0, %c0_0] : memref<16x2xf32, #tpu.memory_space<vmem>>, vector<16x1xf32>
    %c0_1 = arith.constant 0 : index
    %c0_2 = arith.constant 0 : index
    %1 = vector.load %arg1[%c0_1, %c0_2] : memref<2x128xf32, #tpu.memory_space<vmem>>, vector<1x128xf32>
    %2 = vector.broadcast %0 : vector<16x1xf32> to vector<16x128xf32>
    %3 = vector.broadcast %1 : vector<1x128xf32> to vector<16x128xf32>
    %4 = arith.mulf %2, %3 : vector<16x128xf32>
    %c0_3 = arith.constant 0 : index
    %c1 = arith.constant 1 : index
    %5 = vector.load %arg2[%c0_3, %c1] : memref<16x2xf32, #tpu.memory_space<vmem>>, vector<16x1xf32>
    %c1_4 = arith.constant 1 : index
    %c0_5 = arith.constant 0 : index
    %6 = vector.load %arg1[%c1_4, %c0_5] : memref<2x128xf32, #tpu.memory_space<vmem>>, vector<1x128xf32>
    %7 = vector.broadcast %5 : vector<16x1xf32> to vector<16x128xf32>
    %8 = vector.broadcast %6 : vector<1x128xf32> to vector<16x128xf32>
    %9 = arith.mulf %7, %8 : vector<16x128xf32>
    %10 = arith.addf %4, %9 : vector<16x128xf32>
    %11 = math.sin %10 : vector<16x128xf32>
    %12 = math.cos %10 : vector<16x128xf32>
    %c0_6 = arith.constant 0 : index
    %c0_7 = arith.constant 0 : index
    %13 = vector.load %arg3[%c0_6, %c0_7] : memref<16x1xf32, #tpu.memory_space<vmem>>, vector<16x1xf32>
    %14 = vector.broadcast %13 : vector<16x1xf32> to vector<16x128xf32>
    %15 = arith.mulf %14, %11 : vector<16x128xf32>
    %16 = vector.broadcast %13 : vector<16x1xf32> to vector<16x128xf32>
    %17 = arith.mulf %16, %12 : vector<16x128xf32>
    %c0_8 = arith.constant 0 : index
    %c0_9 = arith.constant 0 : index
    %18 = vector.load %arg4[%c0_8, %c0_9] : memref<32x128xf32, #tpu.memory_space<vmem>>, vector<16x128xf32>
    tpu.vector_store %arg4[%c0_8, %c0_9], %15 {strides = array<i32>} : memref<32x128xf32, #tpu.memory_space<vmem>>, vector<16x128xf32>,
    %c16 = arith.constant 16 : index
    %c0_10 = arith.constant 0 : index
    %19 = vector.load %arg4[%c16, %c0_10] : memref<32x128xf32, #tpu.memory_space<vmem>>, vector<16x128xf32>
    tpu.vector_store %arg4[%c16, %c0_10], %17 {strides = array<i32>} : memref<32x128xf32, #tpu.memory_space<vmem>>, vector<16x128xf32>,
    return
  }
  func.func @transform_0(%arg0: i32) -> (i32, i32) {
    %c0_i32 = arith.constant 0 : i32
    %c0_i32_0 = arith.constant 0 : i32
    return %c0_i32, %arg0 : i32, i32
  }
  func.func @transform_1(%arg0: i32) -> (i32, i32) {
    %c0_i32 = arith.constant 0 : i32
    %c0_i32_0 = arith.constant 0 : i32
    %c0_i32_1 = arith.constant 0 : i32
    return %c0_i32, %c0_i32_0 : i32, i32
  }
  func.func @transform_2(%arg0: i32) -> (i32, i32) {
    %c0_i32 = arith.constant 0 : i32
    %c0_i32_0 = arith.constant 0 : i32
    %c0_i32_1 = arith.constant 0 : i32
    return %c0_i32, %c0_i32_0 : i32, i32
  }
  func.func @transform_3(%arg0: i32) -> (i32, i32) {
    %c0_i32 = arith.constant 0 : i32
    %c0_i32_0 = arith.constant 0 : i32
    return %c0_i32, %arg0 : i32, i32
  }
}

</mosaic_0001>

<bundles_post_ra>
// kernel: gaussian_encoding.1
= control target key start
LH: loop header
LB: loop body
LE: loop exit
PB: predicated region body
PF: predicated region fallthrough
CT: control target
= control target key end

     0   :  { %v533_v0 = vmov 1   ;;  %v534_v1 = vmov 0   ;;  %v535_v36 = vmov 2102212464   ;;  %v536_v38 = vmov 920167782   ;;  %s672_s1 = inlined_call_operand.vmem [shape: f32[16,2], index: 1, kind: input, shape index: {}]   ;;  %s673_s2 = inlined_call_operand.vmem [shape: f32[16,1], index: 2, kind: input, shape index: {}]   ;;  %s674_s0 = inlined_call_operand.vmem [shape: f32[2,128], index: 0, kind: input, shape index: {}]   ;;  %s675_s3 = inlined_call_operand.vmem [shape: f32[32,128], index: 3, kind: output, shape index: {}]  }
   0x1   :  { %523 = vset.pattern.permute.xlu1 %v533_v0  ;;  %522 = vset.pattern.permute.xlu0 %v534_v1  ;;  %v14_v2 = vld [vmem:[%s672_s1] sm:$0xff]  ;;  %v15_v3 = vld [vmem:[%s672_s1 + $0x8] sm:$0xff]  ;;  %v537_v42 = vmov 1326507024   ;;  %v538_v46 = vmov 683565275  }
   0x2   :  { %35 = vperm.xlu1 %523, %v14_v2   ;;  %19 = vperm.xlu0 %522, %v14_v2   ;;  %v464_v4 = vld [vmem:[%s673_s2] sm:$0xff]  ;;  %v465_v5 = vld [vmem:[%s673_s2 + $0x8] sm:$0xff]  ;;  %v539_v48 = vmov 2475754826   ;;  %v540_v50 = vmov 2131351028  }
   0x3   :  { %v489_v6 = vld [vmem:[%s674_s0 + $0x1] ss:$0 sm:$0xff]  ;;  %v488_v7 = vld [vmem:[%s674_s0] ss:$0 sm:$0xff] }
   0x6   :  { %39 = vperm.xlu1 %523, %v15_v3   ;;  %24 = vperm.xlu0 %522, %v15_v3  }
   0xa   :  { %468 = vperm.xlu0 %522, %v464_v4   ;;  %524 = vset.pattern.permute.xlu1 %v534_v1 }
   0xb   :  { %473 = vperm.xlu1 %524, %v465_v5  }
  0x81   :  { %v36_v8 = vpop.permute.xlu1 %35  ;;  %v20_v9 = vpop.permute.xlu0 %19 }
  0x82   :  { %v46_v10 = vmul.f32 %v489_v6, %v36_v8  ;;  %v31_v11 = vmul.f32 %v488_v7, %v20_v9 }
  0x84   :  { %v579_v12 = vadd.f32 %v46_v10, %v31_v11 }
  0x85   :  { %v40_v13 = vpop.permute.xlu1 %39  ;;  %v25_v14 = vpop.permute.xlu0 %24 }
  0x86   :  { %v53_v15 = vand.u32 2139095040, %v579_v12  ;;  %v47_v16 = vmul.f32 %v489_v6, %v40_v13  ;;  %v32_v17 = vmul.f32 %v488_v7, %v25_v14  ;;  %v50_v18 = vand.u32 2147483647, %v579_v12 }
  0x87   :  { %vm52_vm14 = vcmp.lt.s32.totalorder %v579_v12, 0 }
  0x88   :  { %v54_v19 = vshrl.u32 %v53_v15, 23  ;;  %v583_v20 = vadd.f32 %v47_v16, %v32_v17  ;;  %v57_v23 = vand.u32 8388607, %v50_v18  ;;  %vm51_vm15 = vcmp.le.f32.partialorder %v50_v18, 0.7853982 }
  0x8a   :  { %v490_v21 = vadd.s32 4294967169, %v54_v19  ;;  %v157_v22 = vand.u32 2139095040, %v583_v20  ;;  %v154_v24 = vand.u32 2147483647, %v583_v20  ;;  %v58_v28 = vor.u32 8388608, %v57_v23 }
  0x8c   :  { %v60_v25 = vadd.s32 1, %v490_v21  ;;  %v158_v26 = vshrl.u32 %v157_v22, 23  ;;  %v591_v30 = vand.u32 8388607, %v154_v24  ;;  %v593_v35 = vshll.u32 %v58_v28, 8 }
  0x8e   :  { %vm61_vm0 = vcmp.gt.s32.totalorder %v60_v25, 0  ;;  %v494_v27 = vadd.s32 4294967169, %v158_v26  ;;  %v162_v40 = vor.u32 8388608, %v591_v30 }
  0x8f   :  { %v62_v29 = vsel %vm61_vm0, %v60_v25, 0  ;;  %vm156_vm0 = vcmp.lt.s32.totalorder %v583_v20, 0 }
  0x90   :  { %v63_v31 = vshrl.u32 %v62_v29, 5  ;;  %v64_v32 = vand.u32 31, %v62_v29  ;;  %v164_v33 = vadd.s32 1, %v494_v27 }
  0x92   :  { %v65_v34 = vsub.s32 32, %v64_v32  ;;  %v76_v37 = vshll.u32 %v535_v36, %v64_v32  ;;  %v79_v39 = vshll.u32 %v536_v38, %v64_v32  ;;  %vm165_vm1 = vcmp.gt.s32.totalorder %v164_v33, 0 }
  0x93   :  { %vm85_vm2 = vcmp.lt.s32.totalorder %v63_v31, 4  ;;  %v166_v44 = vsel %vm165_vm1, %v164_v33, 0  ;;  %v67_v47 = vshll.u32 %v538_v46, %v64_v32  ;;  %v70_v54 = vshll.u32 %v539_v48, %v64_v32 }
  0x94   :  { %v77_v41 = vshrl.u32 %v536_v38, %v65_v34  ;;  %v80_v43 = vshrl.u32 %v537_v42, %v65_v34  ;;  %v168_v45 = vand.u32 31, %v166_v44  ;;  %v68_v49 = vshrl.u32 %v539_v48, %v65_v34 }
  0x95   :  { %v71_v51 = vshrl.u32 %v540_v50, %v65_v34  ;;  %v74_v55 = vshrl.u32 %v535_v36, %v65_v34  ;;  %v597_v56 = vshrl.u32 %v166_v44, 5  ;;  %v73_v58 = vshll.u32 %v540_v50, %v64_v32 }
  0x96   :  { %v78_v52 = vor.u32 %v77_v41, %v76_v37  ;;  %v81_v53 = vor.u32 %v80_v43, %v79_v39  ;;  %v169_v57 = vsub.s32 32, %v168_v45  ;;  %vm82_vm3 = vcmp.lt.s32.totalorder %v63_v31, 1 }
  0x97   :  { %v183_v60 = vshll.u32 %v536_v38, %v168_v45  ;;  %v69_v61 = vor.u32 %v68_v49, %v67_v47  ;;  %v72_v62 = vor.u32 %v71_v51, %v70_v54  ;;  %v75_v2 = vor.u32 %v74_v55, %v73_v58 }
  0x98   :  { %v91_v59 = vsel %vm85_vm2, %v78_v52, 920167782  ;;  %v95_v63 = vsel %vm85_vm2, %v81_v53, 1326507024  ;;  %v181_v0 = vshrl.u32 %v536_v38, %v169_v57  ;;  %v184_v1 = vshrl.u32 %v537_v42, %v169_v57 }
  0x99   :  { %v180_v3 = vshll.u32 %v535_v36, %v168_v45  ;;  %v66_v4 = vshrl.u32 %v538_v46, %v65_v34  ;;  %vm84_vm4 = vcmp.lt.s32.totalorder %v63_v31, 3  ;;  %v90_v5 = vsel %vm82_vm3, %v69_v61, %v72_v62 }
  0x9a   :  { %v185_v6 = vor.u32 %v184_v1, %v183_v60  ;;  %vm83_vm5 = vcmp.lt.s32.totalorder %v63_v31, 2  ;;  %v87_v7 = vsel %vm85_vm2, %v75_v2, 2102212464  ;;  %v92_v8 = vsel %vm84_vm4, %v75_v2, %v91_v59 }
  0x9b   :  { %vm189_vm6 = vcmp.lt.s32.totalorder %v597_v56, 4  ;;  %v93_v9 = vsel %vm83_vm5, %v90_v5, %v92_v8  ;;  %v94_v10 = vsel %vm82_vm3, %v72_v62, %v75_v2  ;;  %v96_v11 = vsel %vm84_vm4, %v78_v52, %v95_v63 }
  0x9c   :  { %v182_v13 = vor.u32 %v181_v0, %v180_v3  ;;  %v86_v14 = vsel %vm82_vm3, %v66_v4, %v69_v61  ;;  %v88_v15 = vsel %vm84_vm4, %v72_v62, %v87_v7  ;;  %v97_v16 = vsel %vm83_vm5, %v94_v10, %v96_v11 }
  0x9d   :  { %v610_v17 = vmul.u32.u64.low %v593_v35, %v97_v16  ;;  %v611_v19 = vmul.u32.u64.high %v593_v35, %v97_v16, %v610_v17  ;;  %v614_v21 = vmul.u32.u64.low %v593_v35, %v93_v9  ;;  %v615_v22 = vmul.u32.u64.high %v593_v35, %v93_v9, %v614_v21 }
  0x9e   :  { %v199_v23 = vsel %vm189_vm6, %v185_v6, 1326507024  ;;  %v171_v25 = vshll.u32 %v538_v46, %v168_v45  ;;  %v172_v26 = vshrl.u32 %v539_v48, %v169_v57  ;;  %v89_v27 = vsel %vm83_vm5, %v86_v14, %v88_v15 }
  0x9f   :  { %v174_v28 = vshll.u32 %v539_v48, %v168_v45  ;;  %v175_v29 = vshrl.u32 %v540_v50, %v169_v57  ;;  %v178_v30 = vshrl.u32 %v535_v36, %v169_v57  ;;  %v195_v32 = vsel %vm189_vm6, %v182_v13, 920167782 }
  0xa0   :  { %v173_v33 = vor.u32 %v172_v26, %v171_v25  ;;  %v177_v34 = vshll.u32 %v540_v50, %v168_v45  ;;  %v202_v37 = vshll.u32 %v162_v40, 8  ;;  %vm107_vm7 = vc.u32 %v611_v19, %v614_v21 }
  0xa1   :  { %v108_v38 = vadd.s32 1, %v615_v22  ;;  %v176_v39 = vor.u32 %v175_v29, %v174_v28  ;;  %vm188_vm8 = vcmp.lt.s32.totalorder %v597_v56, 3  ;;  %v105_v41 = vmul.u32 %v593_v35, %v89_v27 }
  0xa2   :  { %v179_v31 = vor.u32 %v178_v30, %v177_v34  ;;  %vm186_vm9 = vcmp.lt.s32.totalorder %v597_v56, 1  ;;  %v200_v36 = vsel %vm188_vm8, %v182_v13, %v199_v23  ;;  %v170_v43 = vshrl.u32 %v538_v46, %v169_v57 }
  0xa3   :  { %v109_v42 = vsel %vm107_vm7, %v108_v38, %v615_v22  ;;  %vm187_vm10 = vcmp.lt.s32.totalorder %v597_v56, 2  ;;  %v194_v40 = vsel %vm186_vm9, %v173_v33, %v176_v39  ;;  %v106_v9 = vadd.s32 %v614_v21, %v611_v19 }
  0xa4   :  { %v110_v44 = vadd.s32 %v109_v42, %v105_v41  ;;  %v191_v45 = vsel %vm189_vm6, %v179_v31, 2102212464  ;;  %v196_v35 = vsel %vm188_vm8, %v179_v31, %v195_v32  ;;  %v198_v47 = vsel %vm186_vm9, %v176_v39, %v179_v31 }
  0xa5   :  { %v190_v48 = vsel %vm186_vm9, %v170_v43, %v173_v33  ;;  %v197_v49 = vsel %vm187_vm10, %v194_v40, %v196_v35  ;;  %v201_v50 = vsel %vm187_vm10, %v198_v47, %v200_v36  ;;  %v192_v52 = vsel %vm188_vm8, %v176_v39, %v191_v45 }
  0xa6   :  { %v111_v51 = vadd.s32 536870912, %v110_v44  ;;  %v639_v53 = vmul.u32.u64.low %v202_v37, %v201_v50  ;;  %v640_v46 = vmul.u32.u64.high %v202_v37, %v201_v50, %v639_v53  ;;  %v193_v58 = vsel %vm187_vm10, %v190_v48, %v192_v52 }
  0xa7   :  { %v642_v54 = vmul.u32.u64.low %v202_v37, %v197_v49  ;;  %v643_v55 = vmul.u32.u64.high %v202_v37, %v197_v49, %v642_v54  ;;  %v209_v62 = vmul.u32 %v202_v37, %v193_v58  ;;  %vm155_vm1 = vcmp.le.f32.partialorder %v154_v24, 0.7853982 }
  0xa8   :  { %v112_v57 = vshrl.u32 %v111_v51, 30  ;;  %vm142_vm8 = vweird.f32 %v579_v12 }
  0xa9   :  { %vm211_vm11 = vc.u32 %v640_v46, %v642_v54  ;;  %v212_v60 = vadd.s32 1, %v643_v55  ;;  %v210_v19 = vadd.s32 %v642_v54, %v640_v46 }
  0xaa   :  { %v113_v59 = vshll.u32 %v112_v57, 30  ;;  %v136_v32 = vsub.s32 4, %v112_v57 }
  0xab   :  { %v213_v63 = vsel %vm211_vm11, %v212_v60, %v643_v55 }
  0xac   :  { %v114_v61 = vsub.s32 %v110_v44, %v113_v59  ;;  %v214_v56 = vadd.s32 %v213_v63, %v209_v62  ;;  %v137_v36 = vsel %vm52_vm14, %v136_v32, %v112_v57 }
  0xad   :  { %v139_v44 = vsel %vm51_vm15, 0, %v137_v36 }
  0xae   :  { %v116_v0 = vsub.s32 0, %v114_v61  ;;  %v215_v2 = vadd.s32 536870912, %v214_v56  ;;  %v143_v48 = vadd.s32 3, %v139_v44  ;;  %v351_v51 = vand.u32 3, %v139_v44 }
  0xb0   :  { %v491_v1 = vmin.u32 %v116_v0, %v114_v61  ;;  %v216_v4 = vshrl.u32 %v215_v2, 30  ;;  %v144_v53 = vand.u32 3, %v143_v48  ;;  %vm356_vm2 = vcmp.eq.s32.totalorder %v351_v51, 2  ;;  %v469_v2 = vpop.permute.xlu0 %468 }
  0xb1   :  { %vm353_vm5 = vcmp.eq.s32.totalorder %v351_v51, 0  ;;  %vm352_vm7 = vcmp.lt.s32.totalorder %v351_v51, 2 }
  0xb2   :  { %v118_v3 = vclz %v491_v1  ;;  %v217_v6 = vshll.u32 %v216_v4, 30  ;;  %v240_v50 = vsub.s32 4, %v216_v4  ;;  %vm149_vm3 = vcmp.eq.s32.totalorder %v144_v53, 2 }
  0xb3   :  { %vm146_vm4 = vcmp.eq.s32.totalorder %v144_v53, 0  ;;  %vm145_vm6 = vcmp.lt.s32.totalorder %v144_v53, 2 }
  0xb4   :  { %v492_v5 = vadd.s32 4294967294, %v118_v3  ;;  %v218_v8 = vsub.s32 %v214_v56, %v217_v6  ;;  %v241_v46 = vsel %vm156_vm0, %v240_v50, %v216_v4 }
  0xb5   :  { %v243_v60 = vsel %vm155_vm1, 0, %v241_v46 }
  0xb6   :  { %vm493_vm12 = vcmp.lt.s32.totalorder %v492_v5, 0  ;;  %v220_v13 = vsub.s32 0, %v218_v8  ;;  %v247_v1 = vadd.s32 3, %v243_v60 }
  0xb7   :  { %v121_v7 = vsel %vm493_vm12, 0, %v492_v5 }
  0xb8   :  { %v122_v10 = vsub.s32 32, %v121_v7  ;;  %v126_v11 = vsub.s32 4294967266, %v121_v7  ;;  %v123_v14 = vshll.u32 %v114_v61, %v121_v7  ;;  %v495_v17 = vmin.u32 %v220_v13, %v218_v8 }
  0xb9   :  { %v248_v7 = vand.u32 3, %v247_v1 }
  0xba   :  { %v124_v15 = vshrl.u32 %v106_v9, %v122_v10  ;;  %v127_v16 = vadd.s32 127, %v126_v11  ;;  %v222_v25 = vclz %v495_v17 }
  0xbb   :  { %vm253_vm9 = vcmp.eq.s32.totalorder %v248_v7, 2  ;;  %vm250_vm11 = vcmp.eq.s32.totalorder %v248_v7, 0 }
  0xbc   :  { %v125_v22 = vor.u32 %v124_v15, %v123_v14  ;;  %v128_v23 = vshll.u32 %v127_v16, 23  ;;  %v496_v27 = vadd.s32 4294967294, %v222_v25  ;;  %v474_v15 = vpop.permute.xlu1 %473 }
  0xbe   :  { %v129_v26 = vor.u32 4788187, %v128_v23  ;;  %v132_v29 = vcvt.s32.f32 %v125_v22  ;;  %vm497_vm13 = vcmp.lt.s32.totalorder %v496_v27, 0 }
  0xbf   :  { %v225_v33 = vsel %vm497_vm13, 0, %v496_v27  ;;  %vm249_vm13 = vcmp.lt.s32.totalorder %v248_v7, 2 }
  0xc0   :  { %v130_v28 = vand.u32 2147483647, %v129_v26  ;;  %v226_v21 = vsub.s32 32, %v225_v33  ;;  %v230_v34 = vsub.s32 4294967266, %v225_v33  ;;  %v227_v38 = vshll.u32 %v218_v8, %v225_v33 }
  0xc1   :  { %v454_v8 = vand.u32 3, %v243_v60 }
  0xc2   :  { %v133_v30 = vmul.f32 %v132_v29, %v130_v28  ;;  %v228_v39 = vshrl.u32 %v210_v19, %v226_v21  ;;  %v231_v41 = vadd.s32 127, %v230_v34 }
  0xc3   :  { %vm459_vm10 = vcmp.eq.s32.totalorder %v454_v8, 2  ;;  %vm456_vm12 = vcmp.eq.s32.totalorder %v454_v8, 0 }
  0xc4   :  { %v134_v37 = vxor.u32 2147483648, %v133_v30  ;;  %v229_v43 = vor.u32 %v228_v39, %v227_v38  ;;  %v232_v40 = vshll.u32 %v231_v41, 23 }
  0xc6   :  { %v135_v31 = vsel %vm52_vm14, %v134_v37, %v133_v30  ;;  %v233_v45 = vor.u32 4788187, %v232_v40  ;;  %v236_v47 = vcvt.s32.f32 %v229_v43  ;;  %vm455_vm14 = vcmp.lt.s32.totalorder %v454_v8, 2 }
  0xc7   :  { %v138_v42 = vsel %vm51_vm15, %v579_v12, %v135_v31  ;;  %vm246_vm15 = vweird.f32 %v583_v20 }
  0xc8   :  { %525 = vcosq.f32 %v138_v42  ;;  %v234_v35 = vand.u32 2147483647, %v233_v45 }
  0xc9   :  { %527 = vsinq.f32 %v138_v42 }
  0xca   :  { %v237_v49 = vmul.f32 %v236_v47, %v234_v35 }
  0xcc   :  { %v238_v52 = vxor.u32 2147483648, %v237_v49 }
  0xce   :  { %v239_v18 = vsel %vm156_vm0, %v238_v52, %v237_v49 }
  0xcf   :  { %v242_v55 = vsel %vm155_vm1, %v583_v20, %v239_v18 }
  0xd0   :  { %529 = vcosq.f32 %v242_v55 }
  0xd1   :  { %531 = vsinq.f32 %v242_v55 }
  0xd2   :  { %v526_v54 = vpop.eup %525 }
  0xd3   :  { %v528_v57 = vpop.eup %527  ;;  %v150_v58 = vxor.u32 2147483648, %v526_v54 }
  0xd4   :  { %v147_v59 = vxor.u32 2147483648, %v528_v57 }
  0xd5   :  { %v151_v61 = vsel %vm149_vm3, %v150_v58, %v528_v57  ;;  %v358_v62 = vsel %vm356_vm2, %v150_v58, %v528_v57 }
  0xd6   :  { %v148_v63 = vsel %vm146_vm4, %v526_v54, %v147_v59  ;;  %v355_v24 = vsel %vm353_vm5, %v526_v54, %v147_v59 }
  0xd7   :  { %v152_v0 = vsel %vm145_vm6, %v148_v63, %v151_v61  ;;  %v359_v56 = vsel %vm352_vm7, %v355_v24, %v358_v62 }
  0xd8   :  { %v153_v3 = vsel %vm142_vm8, nan, %v152_v0  ;;  %v360_v4 = vsel %vm142_vm8, nan, %v359_v56 }
  0xd9   :  { %v476_v5 = vmul.f32 %v469_v2, %v153_v3  ;;  %v478_v6 = vmul.f32 %v469_v2, %v360_v4 }
  0xda   :  { %v530_v9 = vpop.eup %529 }
  0xdb   :  { %480 = vst [vmem:[%s675_s3] sm:$0xff] %v476_v5  ;;  %482 = vst [vmem:[%s675_s3 + $0x10] sm:$0xff] %v478_v6  ;;  %v532_v12 = vpop.eup %531  ;;  %v254_v10 = vxor.u32 2147483648, %v530_v9 }
  0xdc   :  { %v251_v11 = vxor.u32 2147483648, %v532_v12 }
  0xdd   :  { %v255_v13 = vsel %vm253_vm9, %v254_v10, %v532_v12  ;;  %v461_v14 = vsel %vm459_vm10, %v254_v10, %v532_v12 }
  0xde   :  { %v252_v16 = vsel %vm250_vm11, %v530_v9, %v251_v11  ;;  %v458_v17 = vsel %vm456_vm12, %v530_v9, %v251_v11 }
  0xdf   :  { %v256_v22 = vsel %vm249_vm13, %v252_v16, %v255_v13  ;;  %v462_v23 = vsel %vm455_vm14, %v458_v17, %v461_v14 }
  0xe0   :  { %v257_v25 = vsel %vm246_vm15, nan, %v256_v22  ;;  %v463_v26 = vsel %vm246_vm15, nan, %v462_v23 }
  0xe1   :  { %v477_v27 = vmul.f32 %v474_v15, %v257_v25  ;;  %v479_v28 = vmul.f32 %v474_v15, %v463_v26 }
  0xe3   :  { %481 = vst [vmem:[%s675_s3 + $0x8] sm:$0xff] %v477_v27  ;;  %483 = vst [vmem:[%s675_s3 + $0x18] sm:$0xff] %v479_v28 }

</bundles_post_ra>
